<compile_context>
chip_gen: v7x
topology: tpu7x:2x2x1
jax: 0.10.0
libtpu: 0.0.40
codegen_flags: <defaults>
</compile_context>

<pallas_src>
import numpy as np
import jax
import jax.numpy as jnp
from jax import lax
from jax.experimental import pallas as pl
from jax.experimental.pallas import tpu as pltpu

# ---------------- problem sizes (small, consistent with the module) ---------
B, TX, TXF = 2, 8, 8     # batch, motion seq len, text seq len
D = 32                   # latent_dim
DT = 64                  # text_latent_dim
H = 4                    # num_heads
HD = D // H              # head_dim = 8
FF = 4 * D               # ffn hidden = 128
LN_EPS = 1e-5            # torch nn.LayerNorm default eps
SCALE = HD ** -0.5       # attention scale


# ---------------- small math helpers (also used inside the kernel) ----------
def _gelu_exact(x):
    # exact (erf-based) GELU, matching torch.nn.GELU() default
    return 0.5 * x * (1.0 + lax.erf(x * 0.7071067811865476))


def _layernorm(x, g, b):
    mu = jnp.mean(x, axis=-1, keepdims=True)
    var = jnp.mean(jnp.square(x - mu), axis=-1, keepdims=True)
    return (x - mu) * lax.rsqrt(var + LN_EPS) * g + b


def _softmax_last(s):
    s = s - jnp.max(s, axis=-1, keepdims=True)
    e = jnp.exp(s)
    return e / jnp.sum(e, axis=-1, keepdims=True)


# ---------------- Pallas kernel ---------------------------------------------
def cross_attn_kernel(x_ref, xf_ref,
                      wq_ref, bq_ref, wkv_ref, bkv_ref, wo_ref, bo_ref,
                      lng_ref, lnb_ref, w1_ref, b1_ref, w2_ref, b2_ref,
                      o_ref):
    x = x_ref[...]                                    # (B*TX, D)  = (16, 32)
    xf = xf_ref[...]                                  # (B*TXF, DT) = (16, 64)

    # ---- fused projections on the flattened token slab -----------------
    q = jnp.dot(x, wq_ref[...], preferred_element_type=jnp.float32) + bq_ref[...]
    kv = jnp.dot(xf, wkv_ref[...], preferred_element_type=jnp.float32) + bkv_ref[...]
    k = kv[:, :D]                                     # (B*TXF, D)
    v = kv[:, D:]                                     # (B*TXF, D)

    # ---- per-(batch, head) attention; static unroll (B*H = 8) ----------
    batch_outs = []
    for b in range(B):                                # static, B = 2
        qb = q[b * TX:(b + 1) * TX, :] * SCALE        # (TX, D)
        kb = k[b * TXF:(b + 1) * TXF, :]              # (TXF, D)
        vb = v[b * TXF:(b + 1) * TXF, :]
        head_outs = []
        for h in range(H):                            # static, H = 4
            c0 = h * HD
            qh = qb[:, c0:c0 + HD]                    # (TX, HD)
            kh = kb[:, c0:c0 + HD]                    # (TXF, HD)
            vh = vb[:, c0:c0 + HD]
            # q @ k^T : contract last dims of both operands
            s = lax.dot_general(qh, kh, (((1,), (1,)), ((), ())),
                                preferred_element_type=jnp.float32)  # (TX, TXF)
            p = _softmax_last(s)                      # dropout = identity (eval)
            head_outs.append(jnp.dot(p, vh, preferred_element_type=jnp.float32))
        batch_outs.append(jnp.concatenate(head_outs, axis=-1))        # (TX, D)
    attn = jnp.concatenate(batch_outs, axis=0)                        # (B*TX, D)

    # ---- output projection ---------------------------------------------
    out = jnp.dot(attn, wo_ref[...], preferred_element_type=jnp.float32) + bo_ref[...]

    # ---- FFN: LayerNorm -> Linear(D,4D) -> GELU -> Linear(4D,D) ---------
    ln = _layernorm(out, lng_ref[...], lnb_ref[...])
    hid = _gelu_exact(
        jnp.dot(ln, w1_ref[...], preferred_element_type=jnp.float32) + b1_ref[...])
    ffn = jnp.dot(hid, w2_ref[...], preferred_element_type=jnp.float32) + b2_ref[...]

    # residuals: out = out + ffn(out); return x + out  (dropout = identity)
    o_ref[...] = x + out + ffn


# ---------------- wrapper -----------------------------------------------------
def mem_efficient_cross_attention(x, xf, params):
    (wq, bq, wk, bk, wv, bv, wo, bo, lng, lnb, w1, b1, w2, b2) = params
    # stack K|V projections into one matmul operand (wrapper-time, free)
    wkv = jnp.concatenate([wk, wv], axis=1)           # (DT, 2D)
    bkv = jnp.concatenate([bk, bv], axis=1)           # (1, 2D)

    inputs = (x.reshape(B * TX, D), xf.reshape(B * TXF, DT),
              wq, bq, wkv, bkv, wo, bo, lng, lnb, w1, b1, w2, b2)

    out = pl.pallas_call(
        cross_attn_kernel,
        out_shape=jax.ShapeDtypeStruct((B * TX, D), jnp.float32),
        # no grid: single kernel invocation; everything fits in a few 10s of KB
        in_specs=[pl.BlockSpec(memory_space=pltpu.MemorySpace.VMEM)
                  for _ in inputs],
        out_specs=pl.BlockSpec(memory_space=pltpu.MemorySpace.VMEM),
    )(*inputs)
    return out.reshape(B, TX, D)


mem_efficient_cross_attention_jit = jax.jit(mem_efficient_cross_attention)


# ---------------- deterministic parameter init -------------------------------
def init_params(key):
    ks = jax.random.split(key, 14)
    s = 0.2
    wq = s * jax.random.normal(ks[0], (D, D), jnp.float32)
    bq = 0.05 * jax.random.normal(ks[1], (1, D), jnp.float32)
    wk = s * jax.random.normal(ks[2], (DT, D), jnp.float32)
    bk = 0.05 * jax.random.normal(ks[3], (1, D), jnp.float32)
    wv = s * jax.random.normal(ks[4], (DT, D), jnp.float32)
    bv = 0.05 * jax.random.normal(ks[5], (1, D), jnp.float32)
    wo = s * jax.random.normal(ks[6], (D, D), jnp.float32)
    bo = 0.05 * jax.random.normal(ks[7], (1, D), jnp.float32)
    lng = 1.0 + 0.1 * jax.random.normal(ks[8], (1, D), jnp.float32)
    lnb = 0.1 * jax.random.normal(ks[9], (1, D), jnp.float32)
    w1 = s * jax.random.normal(ks[10], (D, FF), jnp.float32)
    b1 = 0.05 * jax.random.normal(ks[11], (1, FF), jnp.float32)
    w2 = s * jax.random.normal(ks[12], (FF, D), jnp.float32)
    b2 = 0.05 * jax.random.normal(ks[13], (1, D), jnp.float32)
    return (wq, bq, wk, bk, wv, bv, wo, bo, lng, lnb, w1, b1, w2, b2)


# ---------------- pure-JAX reference (mirrors the PyTorch forward) -----------
def reference(x, xf, params):
    (wq, bq, wk, bk, wv, bv, wo, bo, lng, lnb, w1, b1, w2, b2) = params
    q = (x @ wq + bq).reshape(B, TX, H, HD).transpose(0, 2, 1, 3)
    k = (xf @ wk + bk).reshape(B, TXF, H, HD).transpose(0, 2, 1, 3)
    v = (xf @ wv + bv).reshape(B, TXF, H, HD).transpose(0, 2, 1, 3)
    # chunk_size (256) >= TX -> the chunk loop is a single full-attention pass
    s = jnp.einsum('bhqd,bhkd->bhqk', q * SCALE, k)
    p = jax.nn.softmax(s, axis=-1)                    # dropout = identity (eval)
    out = jnp.einsum('bhqk,bhkd->bhqd', p, v)
    out = out.transpose(0, 2, 1, 3).reshape(B, TX, D)
    out = out @ wo + bo
    ln = _layernorm(out, lng, lnb)
    ffn = _gelu_exact(ln @ w1 + b1) @ w2 + b2         # dropout = identity (eval)
    out = out + ffn
    return x + out


if __name__ == "__main__":
    key = jax.random.PRNGKey(0)
    kx, kxf, kp = jax.random.split(key, 3)
    x = jax.random.normal(kx, (B, TX, D), jnp.float32)
    xf = jax.random.normal(kxf, (B, TXF, DT), jnp.float32)
    params = init_params(kp)

    out = mem_efficient_cross_attention_jit(x, xf, params)
    jax.block_until_ready(out)

    ref = reference(x, xf, params)
    np.testing.assert_allclose(np.asarray(out), np.asarray(ref),
                               rtol=2e-3, atol=2e-3)
    print("KERNEL_OK")
</pallas_src>

<mosaic_0001>
module attributes {stable_mosaic.version = 11 : i64} {
  func.func @cross_attn_kernel(%arg0: memref<16x32xf32, #tpu.memory_space<vmem>>, %arg1: memref<16x64xf32, #tpu.memory_space<vmem>>, %arg2: memref<32x32xf32, #tpu.memory_space<vmem>>, %arg3: memref<1x32xf32, #tpu.memory_space<vmem>>, %arg4: memref<64x64xf32, #tpu.memory_space<vmem>>, %arg5: memref<1x64xf32, #tpu.memory_space<vmem>>, %arg6: memref<32x32xf32, #tpu.memory_space<vmem>>, %arg7: memref<1x32xf32, #tpu.memory_space<vmem>>, %arg8: memref<1x32xf32, #tpu.memory_space<vmem>>, %arg9: memref<1x32xf32, #tpu.memory_space<vmem>>, %arg10: memref<32x128xf32, #tpu.memory_space<vmem>>, %arg11: memref<1x128xf32, #tpu.memory_space<vmem>>, %arg12: memref<128x32xf32, #tpu.memory_space<vmem>>, %arg13: memref<1x32xf32, #tpu.memory_space<vmem>>, %arg14: memref<16x32xf32, #tpu.memory_space<vmem>>) attributes {dimension_semantics = [], scalar_prefetch = 0 : i64, scratch_operands = 0 : i64, tpu.core_type = #tpu.core_type<tc>} {
    %c0 = arith.constant 0 : index
    %c0_0 = arith.constant 0 : index
    %0 = vector.load %arg0[%c0, %c0_0] : memref<16x32xf32, #tpu.memory_space<vmem>>, vector<16x32xf32>
    %c0_1 = arith.constant 0 : index
    %c0_2 = arith.constant 0 : index
    %1 = vector.load %arg1[%c0_1, %c0_2] : memref<16x64xf32, #tpu.memory_space<vmem>>, vector<16x64xf32>
    %c0_3 = arith.constant 0 : index
    %c0_4 = arith.constant 0 : index
    %2 = vector.load %arg2[%c0_3, %c0_4] : memref<32x32xf32, #tpu.memory_space<vmem>>, vector<32x32xf32>
    %cst = arith.constant dense<0.000000e+00> : vector<16x32xf32>
    %3 = tpu.matmul %0, %2, %cst {dimension_numbers = #tpu.dot_dimension_numbers<[1], [0], [0], [1], [0, 0, 1, 1], [], []>} : vector<16x32xf32>, vector<32x32xf32>, vector<16x32xf32> -> vector<16x32xf32>
    %c0_5 = arith.constant 0 : index
    %c0_6 = arith.constant 0 : index
    %4 = vector.load %arg3[%c0_5, %c0_6] : memref<1x32xf32, #tpu.memory_space<vmem>>, vector<1x32xf32>
    %5 = vector.broadcast %4 : vector<1x32xf32> to vector<16x32xf32>
    %6 = arith.addf %3, %5 : vector<16x32xf32>
    %c0_7 = arith.constant 0 : index
    %c0_8 = arith.constant 0 : index
    %7 = vector.load %arg4[%c0_7, %c0_8] : memref<64x64xf32, #tpu.memory_space<vmem>>, vector<64x64xf32>
    %cst_9 = arith.constant dense<0.000000e+00> : vector<16x64xf32>
    %8 = tpu.matmul %1, %7, %cst_9 {dimension_numbers = #tpu.dot_dimension_numbers<[1], [0], [0], [1], [0, 0, 1, 1], [], []>} : vector<16x64xf32>, vector<64x64xf32>, vector<16x64xf32> -> vector<16x64xf32>
    %c0_10 = arith.constant 0 : index
    %c0_11 = arith.constant 0 : index
    %9 = vector.load %arg5[%c0_10, %c0_11] : memref<1x64xf32, #tpu.memory_space<vmem>>, vector<1x64xf32>
    %10 = vector.broadcast %9 : vector<1x64xf32> to vector<16x64xf32>
    %11 = arith.addf %8, %10 : vector<16x64xf32>
    %12 = vector.extract_strided_slice %11 {offsets = [0, 0], sizes = [16, 32], strides = [1, 1]} : vector<16x64xf32> to vector<16x32xf32>
    %13 = vector.extract_strided_slice %11 {offsets = [0, 32], sizes = [16, 32], strides = [1, 1]} : vector<16x64xf32> to vector<16x32xf32>
    %14 = vector.extract_strided_slice %6 {offsets = [0, 0], sizes = [8, 32], strides = [1, 1]} : vector<16x32xf32> to vector<8x32xf32>
    %cst_12 = arith.constant 0.353553385 : f32
    %15 = vector.broadcast %cst_12 : f32 to vector<8x32xf32>
    %16 = arith.mulf %14, %15 : vector<8x32xf32>
    %17 = vector.extract_strided_slice %12 {offsets = [0, 0], sizes = [8, 32], strides = [1, 1]} : vector<16x32xf32> to vector<8x32xf32>
    %18 = vector.extract_strided_slice %13 {offsets = [0, 0], sizes = [8, 32], strides = [1, 1]} : vector<16x32xf32> to vector<8x32xf32>
    %19 = vector.extract_strided_slice %16 {offsets = [0, 0], sizes = [8, 8], strides = [1, 1]} : vector<8x32xf32> to vector<8x8xf32>
    %20 = vector.extract_strided_slice %17 {offsets = [0, 0], sizes = [8, 8], strides = [1, 1]} : vector<8x32xf32> to vector<8x8xf32>
    %21 = vector.extract_strided_slice %18 {offsets = [0, 0], sizes = [8, 8], strides = [1, 1]} : vector<8x32xf32> to vector<8x8xf32>
    %cst_13 = arith.constant dense<0.000000e+00> : vector<8x8xf32>
    %22 = tpu.matmul %19, %20, %cst_13 {dimension_numbers = #tpu.dot_dimension_numbers<[1], [1], [0], [0], [0, 0, 1, 0], [], []>} : vector<8x8xf32>, vector<8x8xf32>, vector<8x8xf32> -> vector<8x8xf32>
    %cst_14 = arith.constant dense<0xFF800000> : vector<8xf32>
    %23 = vector.multi_reduction <maximumf>, %22, %cst_14 [1] : vector<8x8xf32> to vector<8xf32>
    %24 = vector.shape_cast %23 : vector<8xf32> to vector<8x1xf32>
    %25 = vector.broadcast %24 : vector<8x1xf32> to vector<8x8xf32>
    %26 = arith.subf %22, %25 : vector<8x8xf32>
    %27 = math.exp %26 : vector<8x8xf32>
    %cst_15 = arith.constant dense<0.000000e+00> : vector<8xf32>
    %28 = vector.multi_reduction <add>, %27, %cst_15 [1] : vector<8x8xf32> to vector<8xf32>
    %29 = vector.shape_cast %28 : vector<8xf32> to vector<8x1xf32>
    %30 = vector.broadcast %29 : vector<8x1xf32> to vector<8x8xf32>
    %31 = arith.divf %27, %30 : vector<8x8xf32>
    %cst_16 = arith.constant dense<0.000000e+00> : vector<8x8xf32>
    %32 = tpu.matmul %31, %21, %cst_16 {dimension_numbers = #tpu.dot_dimension_numbers<[1], [0], [0], [1], [0, 0, 1, 1], [], []>} : vector<8x8xf32>, vector<8x8xf32>, vector<8x8xf32> -> vector<8x8xf32>
    %33 = vector.extract_strided_slice %16 {offsets = [0, 8], sizes = [8, 8], strides = [1, 1]} : vector<8x32xf32> to vector<8x8xf32>
    %34 = vector.extract_strided_slice %17 {offsets = [0, 8], sizes = [8, 8], strides = [1, 1]} : vector<8x32xf32> to vector<8x8xf32>
    %35 = vector.extract_strided_slice %18 {offsets = [0, 8], sizes = [8, 8], strides = [1, 1]} : vector<8x32xf32> to vector<8x8xf32>
    %cst_17 = arith.constant dense<0.000000e+00> : vector<8x8xf32>
    %36 = tpu.matmul %33, %34, %cst_17 {dimension_numbers = #tpu.dot_dimension_numbers<[1], [1], [0], [0], [0, 0, 1, 0], [], []>} : vector<8x8xf32>, vector<8x8xf32>, vector<8x8xf32> -> vector<8x8xf32>
    %cst_18 = arith.constant dense<0xFF800000> : vector<8xf32>
    %37 = vector.multi_reduction <maximumf>, %36, %cst_18 [1] : vector<8x8xf32> to vector<8xf32>
    %38 = vector.shape_cast %37 : vector<8xf32> to vector<8x1xf32>
    %39 = vector.broadcast %38 : vector<8x1xf32> to vector<8x8xf32>
    %40 = arith.subf %36, %39 : vector<8x8xf32>
    %41 = math.exp %40 : vector<8x8xf32>
    %cst_19 = arith.constant dense<0.000000e+00> : vector<8xf32>
    %42 = vector.multi_reduction <add>, %41, %cst_19 [1] : vector<8x8xf32> to vector<8xf32>
    %43 = vector.shape_cast %42 : vector<8xf32> to vector<8x1xf32>
    %44 = vector.broadcast %43 : vector<8x1xf32> to vector<8x8xf32>
    %45 = arith.divf %41, %44 : vector<8x8xf32>
    %cst_20 = arith.constant dense<0.000000e+00> : vector<8x8xf32>
    %46 = tpu.matmul %45, %35, %cst_20 {dimension_numbers = #tpu.dot_dimension_numbers<[1], [0], [0], [1], [0, 0, 1, 1], [], []>} : vector<8x8xf32>, vector<8x8xf32>, vector<8x8xf32> -> vector<8x8xf32>
    %47 = vector.extract_strided_slice %16 {offsets = [0, 16], sizes = [8, 8], strides = [1, 1]} : vector<8x32xf32> to vector<8x8xf32>
    %48 = vector.extract_strided_slice %17 {offsets = [0, 16], sizes = [8, 8], strides = [1, 1]} : vector<8x32xf32> to vector<8x8xf32>
    %49 = vector.extract_strided_slice %18 {offsets = [0, 16], sizes = [8, 8], strides = [1, 1]} : vector<8x32xf32> to vector<8x8xf32>
    %cst_21 = arith.constant dense<0.000000e+00> : vector<8x8xf32>
    %50 = tpu.matmul %47, %48, %cst_21 {dimension_numbers = #tpu.dot_dimension_numbers<[1], [1], [0], [0], [0, 0, 1, 0], [], []>} : vector<8x8xf32>, vector<8x8xf32>, vector<8x8xf32> -> vector<8x8xf32>
    %cst_22 = arith.constant dense<0xFF800000> : vector<8xf32>
    %51 = vector.multi_reduction <maximumf>, %50, %cst_22 [1] : vector<8x8xf32> to vector<8xf32>
    %52 = vector.shape_cast %51 : vector<8xf32> to vector<8x1xf32>
    %53 = vector.broadcast %52 : vector<8x1xf32> to vector<8x8xf32>
    %54 = arith.subf %50, %53 : vector<8x8xf32>
    %55 = math.exp %54 : vector<8x8xf32>
    %cst_23 = arith.constant dense<0.000000e+00> : vector<8xf32>
    %56 = vector.multi_reduction <add>, %55, %cst_23 [1] : vector<8x8xf32> to vector<8xf32>
    %57 = vector.shape_cast %56 : vector<8xf32> to vector<8x1xf32>
    %58 = vector.broadcast %57 : vector<8x1xf32> to vector<8x8xf32>
    %59 = arith.divf %55, %58 : vector<8x8xf32>
    %cst_24 = arith.constant dense<0.000000e+00> : vector<8x8xf32>
    %60 = tpu.matmul %59, %49, %cst_24 {dimension_numbers = #tpu.dot_dimension_numbers<[1], [0], [0], [1], [0, 0, 1, 1], [], []>} : vector<8x8xf32>, vector<8x8xf32>, vector<8x8xf32> -> vector<8x8xf32>
    %61 = vector.extract_strided_slice %16 {offsets = [0, 24], sizes = [8, 8], strides = [1, 1]} : vector<8x32xf32> to vector<8x8xf32>
    %62 = vector.extract_strided_slice %17 {offsets = [0, 24], sizes = [8, 8], strides = [1, 1]} : vector<8x32xf32> to vector<8x8xf32>
    %63 = vector.extract_strided_slice %18 {offsets = [0, 24], sizes = [8, 8], strides = [1, 1]} : vector<8x32xf32> to vector<8x8xf32>
    %cst_25 = arith.constant dense<0.000000e+00> : vector<8x8xf32>
    %64 = tpu.matmul %61, %62, %cst_25 {dimension_numbers = #tpu.dot_dimension_numbers<[1], [1], [0], [0], [0, 0, 1, 0], [], []>} : vector<8x8xf32>, vector<8x8xf32>, vector<8x8xf32> -> vector<8x8xf32>
    %cst_26 = arith.constant dense<0xFF800000> : vector<8xf32>
    %65 = vector.multi_reduction <maximumf>, %64, %cst_26 [1] : vector<8x8xf32> to vector<8xf32>
    %66 = vector.shape_cast %65 : vector<8xf32> to vector<8x1xf32>
    %67 = vector.broadcast %66 : vector<8x1xf32> to vector<8x8xf32>
    %68 = arith.subf %64, %67 : vector<8x8xf32>
    %69 = math.exp %68 : vector<8x8xf32>
    %cst_27 = arith.constant dense<0.000000e+00> : vector<8xf32>
    %70 = vector.multi_reduction <add>, %69, %cst_27 [1] : vector<8x8xf32> to vector<8xf32>
    %71 = vector.shape_cast %70 : vector<8xf32> to vector<8x1xf32>
    %72 = vector.broadcast %71 : vector<8x1xf32> to vector<8x8xf32>
    %73 = arith.divf %69, %72 : vector<8x8xf32>
    %cst_28 = arith.constant dense<0.000000e+00> : vector<8x8xf32>
    %74 = tpu.matmul %73, %63, %cst_28 {dimension_numbers = #tpu.dot_dimension_numbers<[1], [0], [0], [1], [0, 0, 1, 1], [], []>} : vector<8x8xf32>, vector<8x8xf32>, vector<8x8xf32> -> vector<8x8xf32>
    %75 = tpu.concatenate %32, %46, %60, %74 in 1 : vector<8x8xf32>, vector<8x8xf32>, vector<8x8xf32>, vector<8x8xf32> -> vector<8x32xf32>
    %76 = vector.extract_strided_slice %6 {offsets = [8, 0], sizes = [8, 32], strides = [1, 1]} : vector<16x32xf32> to vector<8x32xf32>
    %cst_29 = arith.constant 0.353553385 : f32
    %77 = vector.broadcast %cst_29 : f32 to vector<8x32xf32>
    %78 = arith.mulf %76, %77 : vector<8x32xf32>
    %79 = vector.extract_strided_slice %12 {offsets = [8, 0], sizes = [8, 32], strides = [1, 1]} : vector<16x32xf32> to vector<8x32xf32>
    %80 = vector.extract_strided_slice %13 {offsets = [8, 0], sizes = [8, 32], strides = [1, 1]} : vector<16x32xf32> to vector<8x32xf32>
    %81 = vector.extract_strided_slice %78 {offsets = [0, 0], sizes = [8, 8], strides = [1, 1]} : vector<8x32xf32> to vector<8x8xf32>
    %82 = vector.extract_strided_slice %79 {offsets = [0, 0], sizes = [8, 8], strides = [1, 1]} : vector<8x32xf32> to vector<8x8xf32>
    %83 = vector.extract_strided_slice %80 {offsets = [0, 0], sizes = [8, 8], strides = [1, 1]} : vector<8x32xf32> to vector<8x8xf32>
    %cst_30 = arith.constant dense<0.000000e+00> : vector<8x8xf32>
    %84 = tpu.matmul %81, %82, %cst_30 {dimension_numbers = #tpu.dot_dimension_numbers<[1], [1], [0], [0], [0, 0, 1, 0], [], []>} : vector<8x8xf32>, vector<8x8xf32>, vector<8x8xf32> -> vector<8x8xf32>
    %cst_31 = arith.constant dense<0xFF800000> : vector<8xf32>
    %85 = vector.multi_reduction <maximumf>, %84, %cst_31 [1] : vector<8x8xf32> to vector<8xf32>
    %86 = vector.shape_cast %85 : vector<8xf32> to vector<8x1xf32>
    %87 = vector.broadcast %86 : vector<8x1xf32> to vector<8x8xf32>
    %88 = arith.subf %84, %87 : vector<8x8xf32>
    %89 = math.exp %88 : vector<8x8xf32>
    %cst_32 = arith.constant dense<0.000000e+00> : vector<8xf32>
    %90 = vector.multi_reduction <add>, %89, %cst_32 [1] : vector<8x8xf32> to vector<8xf32>
    %91 = vector.shape_cast %90 : vector<8xf32> to vector<8x1xf32>
    %92 = vector.broadcast %91 : vector<8x1xf32> to vector<8x8xf32>
    %93 = arith.divf %89, %92 : vector<8x8xf32>
    %cst_33 = arith.constant dense<0.000000e+00> : vector<8x8xf32>
    %94 = tpu.matmul %93, %83, %cst_33 {dimension_numbers = #tpu.dot_dimension_numbers<[1], [0], [0], [1], [0, 0, 1, 1], [], []>} : vector<8x8xf32>, vector<8x8xf32>, vector<8x8xf32> -> vector<8x8xf32>
    %95 = vector.extract_strided_slice %78 {offsets = [0, 8], sizes = [8, 8], strides = [1, 1]} : vector<8x32xf32> to vector<8x8xf32>
    %96 = vector.extract_strided_slice %79 {offsets = [0, 8], sizes = [8, 8], strides = [1, 1]} : vector<8x32xf32> to vector<8x8xf32>
    %97 = vector.extract_strided_slice %80 {offsets = [0, 8], sizes = [8, 8], strides = [1, 1]} : vector<8x32xf32> to vector<8x8xf32>
    %cst_34 = arith.constant dense<0.000000e+00> : vector<8x8xf32>
    %98 = tpu.matmul %95, %96, %cst_34 {dimension_numbers = #tpu.dot_dimension_numbers<[1], [1], [0], [0], [0, 0, 1, 0], [], []>} : vector<8x8xf32>, vector<8x8xf32>, vector<8x8xf32> -> vector<8x8xf32>
    %cst_35 = arith.constant dense<0xFF800000> : vector<8xf32>
    %99 = vector.multi_reduction <maximumf>, %98, %cst_35 [1] : vector<8x8xf32> to vector<8xf32>
    %100 = vector.shape_cast %99 : vector<8xf32> to vector<8x1xf32>
    %101 = vector.broadcast %100 : vector<8x1xf32> to vector<8x8xf32>
    %102 = arith.subf %98, %101 : vector<8x8xf32>
    %103 = math.exp %102 : vector<8x8xf32>
    %cst_36 = arith.constant dense<0.000000e+00> : vector<8xf32>
    %104 = vector.multi_reduction <add>, %103, %cst_36 [1] : vector<8x8xf32> to vector<8xf32>
    %105 = vector.shape_cast %104 : vector<8xf32> to vector<8x1xf32>
    %106 = vector.broadcast %105 : vector<8x1xf32> to vector<8x8xf32>
    %107 = arith.divf %103, %106 : vector<8x8xf32>
    %cst_37 = arith.constant dense<0.000000e+00> : vector<8x8xf32>
    %108 = tpu.matmul %107, %97, %cst_37 {dimension_numbers = #tpu.dot_dimension_numbers<[1], [0], [0], [1], [0, 0, 1, 1], [], []>} : vector<8x8xf32>, vector<8x8xf32>, vector<8x8xf32> -> vector<8x8xf32>
    %109 = vector.extract_strided_slice %78 {offsets = [0, 16], sizes = [8, 8], strides = [1, 1]} : vector<8x32xf32> to vector<8x8xf32>
    %110 = vector.extract_strided_slice %79 {offsets = [0, 16], sizes = [8, 8], strides = [1, 1]} : vector<8x32xf32> to vector<8x8xf32>
    %111 = vector.extract_strided_slice %80 {offsets = [0, 16], sizes = [8, 8], strides = [1, 1]} : vector<8x32xf32> to vector<8x8xf32>
    %cst_38 = arith.constant dense<0.000000e+00> : vector<8x8xf32>
    %112 = tpu.matmul %109, %110, %cst_38 {dimension_numbers = #tpu.dot_dimension_numbers<[1], [1], [0], [0], [0, 0, 1, 0], [], []>} : vector<8x8xf32>, vector<8x8xf32>, vector<8x8xf32> -> vector<8x8xf32>
    %cst_39 = arith.constant dense<0xFF800000> : vector<8xf32>
    %113 = vector.multi_reduction <maximumf>, %112, %cst_39 [1] : vector<8x8xf32> to vector<8xf32>
    %114 = vector.shape_cast %113 : vector<8xf32> to vector<8x1xf32>
    %115 = vector.broadcast %114 : vector<8x1xf32> to vector<8x8xf32>
    %116 = arith.subf %112, %115 : vector<8x8xf32>
    %117 = math.exp %116 : vector<8x8xf32>
    %cst_40 = arith.constant dense<0.000000e+00> : vector<8xf32>
    %118 = vector.multi_reduction <add>, %117, %cst_40 [1] : vector<8x8xf32> to vector<8xf32>
    %119 = vector.shape_cast %118 : vector<8xf32> to vector<8x1xf32>
    %120 = vector.broadcast %119 : vector<8x1xf32> to vector<8x8xf32>
    %121 = arith.divf %117, %120 : vector<8x8xf32>
    %cst_41 = arith.constant dense<0.000000e+00> : vector<8x8xf32>
    %122 = tpu.matmul %121, %111, %cst_41 {dimension_numbers = #tpu.dot_dimension_numbers<[1], [0], [0], [1], [0, 0, 1, 1], [], []>} : vector<8x8xf32>, vector<8x8xf32>, vector<8x8xf32> -> vector<8x8xf32>
    %123 = vector.extract_strided_slice %78 {offsets = [0, 24], sizes = [8, 8], strides = [1, 1]} : vector<8x32xf32> to vector<8x8xf32>
    %124 = vector.extract_strided_slice %79 {offsets = [0, 24], sizes = [8, 8], strides = [1, 1]} : vector<8x32xf32> to vector<8x8xf32>
    %125 = vector.extract_strided_slice %80 {offsets = [0, 24], sizes = [8, 8], strides = [1, 1]} : vector<8x32xf32> to vector<8x8xf32>
    %cst_42 = arith.constant dense<0.000000e+00> : vector<8x8xf32>
    %126 = tpu.matmul %123, %124, %cst_42 {dimension_numbers = #tpu.dot_dimension_numbers<[1], [1], [0], [0], [0, 0, 1, 0], [], []>} : vector<8x8xf32>, vector<8x8xf32>, vector<8x8xf32> -> vector<8x8xf32>
    %cst_43 = arith.constant dense<0xFF800000> : vector<8xf32>
    %127 = vector.multi_reduction <maximumf>, %126, %cst_43 [1] : vector<8x8xf32> to vector<8xf32>
    %128 = vector.shape_cast %127 : vector<8xf32> to vector<8x1xf32>
    %129 = vector.broadcast %128 : vector<8x1xf32> to vector<8x8xf32>
    %130 = arith.subf %126, %129 : vector<8x8xf32>
    %131 = math.exp %130 : vector<8x8xf32>
    %cst_44 = arith.constant dense<0.000000e+00> : vector<8xf32>
    %132 = vector.multi_reduction <add>, %131, %cst_44 [1] : vector<8x8xf32> to vector<8xf32>
    %133 = vector.shape_cast %132 : vector<8xf32> to vector<8x1xf32>
    %134 = vector.broadcast %133 : vector<8x1xf32> to vector<8x8xf32>
    %135 = arith.divf %131, %134 : vector<8x8xf32>
    %cst_45 = arith.constant dense<0.000000e+00> : vector<8x8xf32>
    %136 = tpu.matmul %135, %125, %cst_45 {dimension_numbers = #tpu.dot_dimension_numbers<[1], [0], [0], [1], [0, 0, 1, 1], [], []>} : vector<8x8xf32>, vector<8x8xf32>, vector<8x8xf32> -> vector<8x8xf32>
    %137 = tpu.concatenate %94, %108, %122, %136 in 1 : vector<8x8xf32>, vector<8x8xf32>, vector<8x8xf32>, vector<8x8xf32> -> vector<8x32xf32>
    %138 = tpu.concatenate %75, %137 in 0 : vector<8x32xf32>, vector<8x32xf32> -> vector<16x32xf32>
    %c0_46 = arith.constant 0 : index
    %c0_47 = arith.constant 0 : index
    %139 = vector.load %arg6[%c0_46, %c0_47] : memref<32x32xf32, #tpu.memory_space<vmem>>, vector<32x32xf32>
    %cst_48 = arith.constant dense<0.000000e+00> : vector<16x32xf32>
    %140 = tpu.matmul %138, %139, %cst_48 {dimension_numbers = #tpu.dot_dimension_numbers<[1], [0], [0], [1], [0, 0, 1, 1], [], []>} : vector<16x32xf32>, vector<32x32xf32>, vector<16x32xf32> -> vector<16x32xf32>
    %c0_49 = arith.constant 0 : index
    %c0_50 = arith.constant 0 : index
    %141 = vector.load %arg7[%c0_49, %c0_50] : memref<1x32xf32, #tpu.memory_space<vmem>>, vector<1x32xf32>
    %142 = vector.broadcast %141 : vector<1x32xf32> to vector<16x32xf32>
    %143 = arith.addf %140, %142 : vector<16x32xf32>
    %c0_51 = arith.constant 0 : index
    %c0_52 = arith.constant 0 : index
    %144 = vector.load %arg8[%c0_51, %c0_52] : memref<1x32xf32, #tpu.memory_space<vmem>>, vector<1x32xf32>
    %c0_53 = arith.constant 0 : index
    %c0_54 = arith.constant 0 : index
    %145 = vector.load %arg9[%c0_53, %c0_54] : memref<1x32xf32, #tpu.memory_space<vmem>>, vector<1x32xf32>
    %cst_55 = arith.constant dense<0.000000e+00> : vector<16xf32>
    %146 = vector.multi_reduction <add>, %143, %cst_55 [1] : vector<16x32xf32> to vector<16xf32>
    %147 = vector.shape_cast %146 : vector<16xf32> to vector<16x1xf32>
    %cst_56 = arith.constant 3.200000e+01 : f32
    %148 = vector.broadcast %cst_56 : f32 to vector<16x1xf32>
    %149 = arith.divf %147, %148 : vector<16x1xf32>
    %150 = vector.broadcast %149 : vector<16x1xf32> to vector<16x32xf32>
    %151 = arith.subf %143, %150 : vector<16x32xf32>
    %152 = arith.mulf %151, %151 : vector<16x32xf32>
    %cst_57 = arith.constant dense<0.000000e+00> : vector<16xf32>
    %153 = vector.multi_reduction <add>, %152, %cst_57 [1] : vector<16x32xf32> to vector<16xf32>
    %154 = vector.shape_cast %153 : vector<16xf32> to vector<16x1xf32>
    %cst_58 = arith.constant 3.200000e+01 : f32
    %155 = vector.broadcast %cst_58 : f32 to vector<16x1xf32>
    %156 = arith.divf %154, %155 : vector<16x1xf32>
    %157 = vector.broadcast %149 : vector<16x1xf32> to vector<16x32xf32>
    %158 = arith.subf %143, %157 : vector<16x32xf32>
    %cst_59 = arith.constant 9.99999974E-6 : f32
    %159 = vector.broadcast %cst_59 : f32 to vector<16x1xf32>
    %160 = arith.addf %156, %159 : vector<16x1xf32>
    %161 = math.rsqrt %160 : vector<16x1xf32>
    %162 = vector.broadcast %161 : vector<16x1xf32> to vector<16x32xf32>
    %163 = arith.mulf %158, %162 : vector<16x32xf32>
    %164 = vector.broadcast %144 : vector<1x32xf32> to vector<16x32xf32>
    %165 = arith.mulf %163, %164 : vector<16x32xf32>
    %166 = vector.broadcast %145 : vector<1x32xf32> to vector<16x32xf32>
    %167 = arith.addf %165, %166 : vector<16x32xf32>
    %c0_60 = arith.constant 0 : index
    %c0_61 = arith.constant 0 : index
    %168 = vector.load %arg10[%c0_60, %c0_61] : memref<32x128xf32, #tpu.memory_space<vmem>>, vector<32x128xf32>
    %cst_62 = arith.constant dense<0.000000e+00> : vector<16x128xf32>
    %169 = tpu.matmul %167, %168, %cst_62 {dimension_numbers = #tpu.dot_dimension_numbers<[1], [0], [0], [1], [0, 0, 1, 1], [], []>} : vector<16x32xf32>, vector<32x128xf32>, vector<16x128xf32> -> vector<16x128xf32>
    %c0_63 = arith.constant 0 : index
    %c0_64 = arith.constant 0 : index
    %170 = vector.load %arg11[%c0_63, %c0_64] : memref<1x128xf32, #tpu.memory_space<vmem>>, vector<1x128xf32>
    %171 = vector.broadcast %170 : vector<1x128xf32> to vector<16x128xf32>
    %172 = arith.addf %169, %171 : vector<16x128xf32>
    %cst_65 = arith.constant 5.000000e-01 : f32
    %173 = vector.broadcast %cst_65 : f32 to vector<16x128xf32>
    %174 = arith.mulf %173, %172 : vector<16x128xf32>
    %cst_66 = arith.constant 0.707106769 : f32
    %175 = vector.broadcast %cst_66 : f32 to vector<16x128xf32>
    %176 = arith.mulf %172, %175 : vector<16x128xf32>
    %177 = math.erf %176 : vector<16x128xf32>
    %cst_67 = arith.constant 1.000000e+00 : f32
    %178 = vector.broadcast %cst_67 : f32 to vector<16x128xf32>
    %179 = arith.addf %178, %177 : vector<16x128xf32>
    %180 = arith.mulf %174, %179 : vector<16x128xf32>
    %c0_68 = arith.constant 0 : index
    %c0_69 = arith.constant 0 : index
    %181 = vector.load %arg12[%c0_68, %c0_69] : memref<128x32xf32, #tpu.memory_space<vmem>>, vector<128x32xf32>
    %cst_70 = arith.constant dense<0.000000e+00> : vector<16x32xf32>
    %182 = tpu.matmul %180, %181, %cst_70 {dimension_numbers = #tpu.dot_dimension_numbers<[1], [0], [0], [1], [0, 0, 1, 1], [], []>} : vector<16x128xf32>, vector<128x32xf32>, vector<16x32xf32> -> vector<16x32xf32>
    %c0_71 = arith.constant 0 : index
    %c0_72 = arith.constant 0 : index
    %183 = vector.load %arg13[%c0_71, %c0_72] : memref<1x32xf32, #tpu.memory_space<vmem>>, vector<1x32xf32>
    %184 = vector.broadcast %183 : vector<1x32xf32> to vector<16x32xf32>
    %185 = arith.addf %182, %184 : vector<16x32xf32>
    %186 = arith.addf %0, %143 : vector<16x32xf32>
    %187 = arith.addf %186, %185 : vector<16x32xf32>
    %c0_73 = arith.constant 0 : index
    %c0_74 = arith.constant 0 : index
    %188 = vector.load %arg14[%c0_73, %c0_74] : memref<16x32xf32, #tpu.memory_space<vmem>>, vector<16x32xf32>
    tpu.vector_store %arg14[%c0_73, %c0_74], %187 {strides = array<i32>} : memref<16x32xf32, #tpu.memory_space<vmem>>, vector<16x32xf32>,
    return
  }
}

</mosaic_0001>

<bundles_post_ra>
// kernel: mem_efficient_cross_attention.1
= control target key start
LH: loop header
LB: loop body
LE: loop exit
PB: predicated region body
PF: predicated region fallthrough
CT: control target
= control target key end

     0   :  { %vm63_vm0 = vcmask 261120   ;;  %s2788_s0 = inlined_call_operand.vmem [shape: f32[16,32], index: 0, kind: input, shape index: {}]   ;;  %s2789_s1 = inlined_call_operand.vmem [shape: f32[16,64], index: 1, kind: input, shape index: {}]   ;;  %s2790_s2 = inlined_call_operand.vmem [shape: f32[32,32], index: 2, kind: input, shape index: {}]   ;;  %s2791_s3 = inlined_call_operand.vmem [shape: f32[1,32], index: 3, kind: input, shape index: {}]   ;;  %s2792_s4 = inlined_call_operand.vmem [shape: f32[64,64], index: 4, kind: input, shape index: {}]   ;;  %s2793_s5 = inlined_call_operand.vmem [shape: f32[1,64], index: 5, kind: input, shape index: {}]   ;;  %s2794_s6 = inlined_call_operand.vmem [shape: f32[32,32], index: 6, kind: input, shape index: {}]   ;;  %s2795_s7 = inlined_call_operand.vmem [shape: f32[1,32], index: 7, kind: input, shape index: {}]   ;;  %s2796_s8 = inlined_call_operand.vmem [shape: f32[1,32], index: 8, kind: input, shape index: {}]   ;;  %s2797_s9 = inlined_call_operand.vmem [shape: f32[1,32], index: 9, kind: input, shape index: {}]   ;;  %s2798_s10 = inlined_call_operand.vmem [shape: f32[32,128], index: 10, kind: input, shape index: {}]   ;;  %s2799_s11 = inlined_call_operand.vmem [shape: f32[1,128], index: 11, kind: input, shape index: {}]   ;;  %s2800_s12 = inlined_call_operand.vmem [shape: f32[128,32], index: 12, kind: input, shape index: {}]   ;;  %s2801_s13 = inlined_call_operand.vmem [shape: f32[1,32], index: 13, kind: input, shape index: {}]   ;;  %s2802_s14 = inlined_call_operand.hbm [shape: f32[16,32], index: 14, kind: output, shape index: {}]  }
   0x1   :  { %v52_v0 = vld [vmem:[%s2790_s2] sm:$0xff]  ;;  %v53_v1 = vld [vmem:[%s2790_s2 + $0x8] sm:$0xff]  ;;  %v54_v2 = vld [vmem:[%s2790_s2 + $0x10] sm:$0xff] }
   0x2   :  { %v2236_v3 = vpack.c.bf16 %v53_v1, %v52_v0  ;;  %v55_v4 = vld [vmem:[%s2790_s2 + $0x18] sm:$0xff]  ;;  %v2490_v5 = vld [vmem:[%s2788_s0] sm:$0xff]  ;;  %v146_v8 = vld [vmem:[%s2792_s4 + $0x8] sm:$0xff] }
   0x3   :  { %v2240_v6 = vpack.c.bf16 %v55_v4, %v54_v2  ;;  %2077 = vmatprep.mubr.msk.f32.mxu1 %vm63_vm0, %v2490_v5  ;;  %v145_v7 = vld [vmem:[%s2792_s4] sm:$0xff] }
   0x4   :  { %2237 = vmatprep.subr.bf16.mxu1 %v2236_v3  ;;  %v2244_v9 = vpack.c.bf16 %v146_v8, %v145_v7 }
   0x5   :  { %2239 = vmatpush3.bf16.msra.mxu1 %v2236_v3 }
   0x6   :  { %2241 = vmatprep.subr.bf16.mxu1 %v2240_v6 }
   0x7   :  { %19 = vsyncpa [#allocation3], 0  ;;  %v147_v10 = vld [vmem:[%s2792_s4 + $0x10] sm:$0xff]  ;;  %v148_v11 = vld [vmem:[%s2792_s4 + $0x18] sm:$0xff]  ;;  %vm160_vm1 = vcmask 523264   ;;  %v2386_v22 = vmov 0.0  }
   0x8   :  { %v2509_v12 = vld [vmem:[%s2788_s0 + $0x8] sm:$0xff]  ;;  %v2248_v13 = vpack.c.bf16 %v148_v11, %v147_v10  ;;  %v50_v14 = vld [vmem:[%s2789_s1] sm:$0xff]  ;;  %v151_v18 = vld [vmem:[%s2792_s4 + $0x30] sm:$0xff]  ;;  %2099 = vmatprep.subr.mxu0 %v2386_v22  ;;  %vm2387_vm2 = vmmov 0   ;;  %vm243_vm3 = vcmask 64512   ;;  %s2388_s28 = smov 96  }
   0x9   :  { %2243 = vmatpush3.bf16.msra.mxu1 %v2240_v6  ;;  %v149_v15 = vld [vmem:[%s2792_s4 + $0x20] sm:$0xff]  ;;  %v150_v16 = vld [vmem:[%s2792_s4 + $0x28] sm:$0xff]  ;;  %v152_v19 = vld [vmem:[%s2792_s4 + $0x38] sm:$0xff]  ;;  %2101 = vmatprep.mubr.msk.f32.mxu0 %vm2387_vm2, %v2386_v22  ;;  %s2391_s29 = smov 104   ;;  %s2392_s30 = smov 88   ;;  %vm915_vm4 = vcmask 130048  }
   0xa   :  { %2245 = vmatprep.subr.bf16.mxu1 %v2244_v9  ;;  %v2252_v17 = vpack.c.bf16 %v150_v16, %v149_v15  ;;  %v2256_v20 = vpack.c.bf16 %v152_v19, %v151_v18  ;;  %v51_v21 = vld [vmem:[%s2789_s1 + $0x8] sm:$0xff]  ;;  %v1952_v25 = vld [vmem:[%s2791_s3] ss:$0 sm:$0xff]  ;;  %s2389_s3 = smov 120   ;;  %s2393_s15 = smov 80   ;;  %vm917_vm5 = vcmask 195584  }
   0xb   :  { %v1955_v26 = vld [vmem:[%s2793_s5] ss:$0 sm:$0xff]  ;;  %s2390_s5 = smov 112   ;;  %s2394_s16 = smov 72  }
   0xc   :  { %2078 = vmatmul.mubr.msk.f32.vlgmr.msra.gmra.mrb[0].mxu1 %vm63_vm0, %v2509_v12  ;;  %s2395_s17 = smov 8   ;;  %s2396_s18 = smov 16  }
   0xd   :  { %2247 = vmatpush3.bf16.msra.mxu1 %v2244_v9  ;;  %2096 = vmatprep.mubr.msk.f32.mxu1 %vm160_vm1, %v50_v14  ;;  %s2397_s19 = smov 24   ;;  %s2398_s25 = smov [#allocation2]  }
   0xe   :  { %2249 = vmatprep.subr.bf16.mxu1 %v2248_v13  ;;  %s1941_s26 = sshll.u32 %s2398_s25, 4  ;;  %s1942_s26 = int_to_ptr.vmem [resolvable:$true] %s1941_s26 }
   0xf   :  { %p2367_p1 = scmp.lt.s32.totalorder %s1942_s26, %s1942_s26 }
  0x11   :  { %2251 = vmatpush3.bf16.msra.mxu1 %v2248_v13 }
  0x12   :  { %2253 = vmatprep.subr.bf16.mxu1 %v2252_v17 }
  0x15   :  { %2255 = vmatpush3.bf16.msra.mxu1 %v2252_v17 }
  0x16   :  { %2257 = vmatprep.subr.bf16.mxu1 %v2256_v20 }
  0x19   :  { %2259 = vmatpush3.bf16.msra.mxu1 %v2256_v20 }
  0x1a   :  { %2114 = vmatprep.subr.mxu1 %v2386_v22 }
  0x1c   :  { %2097 = vmatmul.mubr.msk.f32.vlgmr.msra.gmra.mrb[2].mxu1 %vm160_vm1, %v51_v21 }
  0x1d   :  { %2116 = vmatprep.mubr.msk.f32.mxu1 %vm2387_vm2, %v2386_v22 }
  0xdf   :  { %v2079_v23 = vpop.f32.mrb[0].mxu1 }
  0xe0   :  { %v136_v24 = vpop.f32.mrb[1].mxu1  ;;  %v142_v32 = vadd.f32 %v2079_v23, %v1952_v25 }
  0xe1   :  { %v137_v28 = vadd.f32 %v1952_v25, %v136_v24 }
  0xe2   :  { %v919_v34 = vmul.f32 0.35355338, %v142_v32 }
  0xe3   :  { %v242_v31 = vmul.f32 0.35355338, %v137_v28 }
  0xef   :  { %v2098_v27 = vpop.f32.mrb[2].mxu1 }
  0xf0   :  { %v233_v29 = vpop.f32.mrb[3].mxu1  ;;  %v2558_v33 = vadd.f32 %v2098_v27, %v1955_v26 }
  0xf1   :  { %v2545_v30 = vadd.f32 %v1955_v26, %v233_v29 }
  0xf3   :  { %331 = vrot.lane.b32.xlu1 %v2545_v30, %s2388_s28  ;;  %2100 = vmatpush3.xpose.msk.msra.mxu0 %vm243_vm3, %v2545_v30 }
  0xf4   :  { %2104 = vmatprep.subr.mxu0 %v2386_v22 }
  0xf6   :  { %2102 = vmatmul.mubr.msk.f32.vlgmr.msra.gmra.mrb[0].mxu0 %vm243_vm3, %v242_v31 }
  0xf7   :  { %409 = vrot.lane.b32.xlu1 %v2545_v30, %s2389_s3  ;;  %2106 = vmatprep.mubr.msk.f32.mxu0 %vm2387_vm2, %v2386_v22 }
  0xfb   :  { %574 = vrot.lane.b32.xlu1 %v2545_v30, %s2390_s5 }
  0xff   :  { %572 = vrot.lane.b32.xlu1 %v242_v31, %s2390_s5 }
 0x103   :  { %739 = vrot.lane.b32.xlu1 %v2545_v30, %s2391_s29 }
 0x107   :  { %737 = vrot.lane.b32.xlu1 %v242_v31, %s2391_s29 }
 0x10b   :  { %1085 = vrot.lane.b32.xlu1 %v2558_v33, %s2389_s3 }
 0x10f   :  { %1083 = vrot.lane.b32.xlu1 %v919_v34, %s2389_s3 }
 0x113   :  { %1248 = vrot.lane.b32.xlu1 %v919_v34, %s2390_s5 }
 0x117   :  { %1413 = vrot.lane.b32.xlu1 %v919_v34, %s2391_s29 }
 0x165   :  { %v332_v35 = vpop.permute.xlu1 %331 }
 0x166   :  { %2105 = vmatpush3.msra.mxu0 %v332_v35 }
 0x167   :  { %2109 = vmatprep.subr.mxu0 %v2386_v22 }
 0x169   :  { %v410_v44 = vpop.permute.xlu1 %409 }
 0x16d   :  { %v575_v45 = vpop.permute.xlu1 %574 }
 0x171   :  { %v573_v47 = vpop.permute.xlu1 %572 }
 0x175   :  { %v740_v49 = vpop.permute.xlu1 %739 }
 0x179   :  { %v738_v51 = vpop.permute.xlu1 %737 }
 0x17d   :  { %v1086_v53 = vpop.permute.xlu1 %1085 }
 0x181   :  { %v1084_v54 = vpop.permute.xlu1 %1083 }
 0x185   :  { %v1249_v56 = vpop.permute.xlu1 %1248 }
 0x189   :  { %v1414_v58 = vpop.permute.xlu1 %1413 }
 0x1c9   :  { %v316_v36 = vpop.f32.mrb[0].mxu0 }
 0x1ca   :  { %v2103_v37 = vpop.f32.mrb[1].mxu0  ;;  %v320_v38 = vsel %vm243_vm3, %v316_v36, -inf }
 0x1cb   :  { %321 = vmax.xlane.f32.xlu0 %v320_v38 }
 0x258   :  { %v322_v39 = vpop.xlane.xlu0 %321 }
 0x259   :  { %v323_v40 = vsub.f32 %v316_v36, %v322_v39 }
 0x25b   :  { %v324_v41 = vmul.f32 1.442695, %v323_v40 }
 0x25d   :  { %2322 = vpow2.f32 %v324_v41 }
 0x267   :  { %v2323_v42 = vpop.eup %2322 }
 0x268   :  { %v326_v43 = vsel %vm243_vm3, %v2323_v42, 0.0 }
 0x269   :  { %327 = vadd.xlane.f32.xlu0 %v326_v43 }
 0x27f   :  { %407 = vrot.lane.b32.xlu0 %v242_v31, %s2389_s3 }
 0x283   :  { %1250 = vrot.lane.b32.xlu0 %v2558_v33, %s2390_s5 }
 0x287   :  { %1415 = vrot.lane.b32.xlu0 %v2558_v33, %s2391_s29 }
 0x2f6   :  { %v328_v46 = vpop.xlane.xlu0 %327 }
 0x2f7   :  { %2324 = vrcp.f32 %v328_v46 }
 0x2fa   :  { %v408_v52 = vpop.permute.xlu0 %407 }
 0x2fe   :  { %v1251_v55 = vpop.permute.xlu0 %1250 }
 0x301   :  { %v2325_v48 = vpop.eup %2324 }
 0x302   :  { %v330_v50 = vmul.f32 %v2325_v48, %v2323_v42  ;;  %v1416_v57 = vpop.permute.xlu0 %1415 }
 0x304   :  { %2107 = vmatmul.mubr.msk.f32.vlgmr.msra.gmra.mrb[2].mxu0 %vm243_vm3, %v330_v50 }
 0x305   :  { %2110 = vmatpush3.xpose.msk.msra.mxu0 %vm243_vm3, %v410_v44  ;;  %2111 = vmatprep.mubr.msk.f32.mxu0 %vm2387_vm2, %v2386_v22 }
 0x306   :  { %2119 = vmatprep.subr.mxu0 %v2386_v22 }
 0x308   :  { %2112 = vmatmul.mubr.msk.f32.vlgmr.msra.gmra.mrb[4].mxu0 %vm243_vm3, %v408_v52 }
 0x309   :  { %2120 = vmatpush3.xpose.msk.msra.mxu0 %vm243_vm3, %v575_v45  ;;  %2121 = vmatprep.mubr.msk.f32.mxu0 %vm2387_vm2, %v2386_v22 }
 0x30a   :  { %2129 = vmatprep.subr.mxu0 %v2386_v22 }
 0x30c   :  { %2122 = vmatmul.mubr.msk.f32.vlgmr.msra.gmra.mrb[6].mxu0 %vm243_vm3, %v573_v47 }
 0x30d   :  { %2130 = vmatpush3.xpose.msk.msra.mxu0 %vm243_vm3, %v740_v49  ;;  %2131 = vmatprep.mubr.msk.f32.mxu0 %vm2387_vm2, %v2386_v22 }
 0x30e   :  { %2139 = vmatprep.subr.mxu0 %v2386_v22 }
 0x310   :  { %2132 = vmatmul.mubr.msk.f32.vlgmr.msra.gmra.mrb[8].mxu0 %vm243_vm3, %v738_v51 }
 0x311   :  { %2140 = vmatpush3.xpose.msk.msra.mxu0 %vm243_vm3, %v2558_v33  ;;  %2141 = vmatprep.mubr.msk.f32.mxu0 %vm2387_vm2, %v2386_v22 }
 0x312   :  { %2149 = vmatprep.subr.mxu0 %v2386_v22 }
 0x314   :  { %2142 = vmatmul.mubr.msk.f32.vlgmr.msra.gmra.mrb[10].mxu0 %vm243_vm3, %v919_v34 }
 0x315   :  { %2150 = vmatpush3.xpose.msk.msra.mxu0 %vm243_vm3, %v1086_v53  ;;  %2151 = vmatprep.mubr.msk.f32.mxu0 %vm2387_vm2, %v2386_v22 }
 0x316   :  { %2159 = vmatprep.subr.mxu0 %v2386_v22 }
 0x318   :  { %2152 = vmatmul.mubr.msk.f32.vlgmr.msra.gmra.mrb[12].mxu0 %vm243_vm3, %v1084_v54 }
 0x319   :  { %2160 = vmatpush3.xpose.msk.msra.mxu0 %vm243_vm3, %v1251_v55  ;;  %2161 = vmatprep.mubr.msk.f32.mxu0 %vm2387_vm2, %v2386_v22 }
 0x31a   :  { %2169 = vmatprep.subr.mxu0 %v2386_v22 }
 0x31c   :  { %2162 = vmatmul.mubr.msk.f32.vlgmr.msra.gmra.mrb[14].mxu0 %vm243_vm3, %v1249_v56 }
 0x31d   :  { %2170 = vmatpush3.xpose.msk.msra.mxu0 %vm243_vm3, %v1416_v57  ;;  %2171 = vmatprep.mubr.msk.f32.mxu0 %vm2387_vm2, %v2386_v22 }
 0x320   :  { %2172 = vmatmul.mubr.msk.f32.vlgmr.msra.gmra.mrb[16].mxu0 %vm243_vm3, %v1414_v58 }
 0x3d7   :  { %v2602_v59 = vpop.f32.mrb[2].mxu0 }
 0x3d8   :  { %v2108_v60 = vpop.f32.mrb[3].mxu0 }
 0x3db   :  { %v481_v61 = vpop.f32.mrb[4].mxu0 }
 0x3dc   :  { %v2113_v62 = vpop.f32.mrb[5].mxu0  ;;  %v485_v63 = vsel %vm243_vm3, %v481_v61, -inf }
 0x3dd   :  { %486 = vmax.xlane.f32.xlu0 %v485_v63 }
 0x3df   :  { %v646_v0 = vpop.f32.mrb[6].mxu0 }
 0x3e0   :  { %v2123_v1 = vpop.f32.mrb[7].mxu0  ;;  %v650_v2 = vsel %vm243_vm3, %v646_v0, -inf }
 0x3e1   :  { %651 = vmax.xlane.f32.xlu1 %v650_v2 }
 0x3e3   :  { %v811_v3 = vpop.f32.mrb[8].mxu0 }
 0x3e4   :  { %v2133_v4 = vpop.f32.mrb[9].mxu0  ;;  %v815_v6 = vsel %vm243_vm3, %v811_v3, -inf }
 0x3e5   :  { %816 = vmax.xlane.f32.xlu0 %v815_v6 }
 0x3e7   :  { %v992_v7 = vpop.f32.mrb[10].mxu0 }
 0x3e8   :  { %v2143_v8 = vpop.f32.mrb[11].mxu0  ;;  %v996_v9 = vsel %vm243_vm3, %v992_v7, -inf }
 0x3e9   :  { %997 = vmax.xlane.f32.xlu0 %v996_v9 }
 0x3eb   :  { %v1157_v10 = vpop.f32.mrb[12].mxu0 }
 0x3ec   :  { %v2153_v11 = vpop.f32.mrb[13].mxu0  ;;  %v1161_v13 = vsel %vm243_vm3, %v1157_v10, -inf }
 0x3ed   :  { %1162 = vmax.xlane.f32.xlu1 %v1161_v13 }
 0x3ef   :  { %v1322_v14 = vpop.f32.mrb[14].mxu0 }
 0x3f0   :  { %v2163_v15 = vpop.f32.mrb[15].mxu0  ;;  %v1326_v16 = vsel %vm243_vm3, %v1322_v14, -inf }
 0x3f1   :  { %1327 = vmax.xlane.f32.xlu0 %v1326_v16 }
 0x3f3   :  { %v1487_v17 = vpop.f32.mrb[16].mxu0 }
 0x3f4   :  { %v2173_v18 = vpop.f32.mrb[17].mxu0  ;;  %v1491_v19 = vsel %vm243_vm3, %v1487_v17, -inf }
 0x3f5   :  { %1492 = vmax.xlane.f32.xlu1 %v1491_v19 }
 0x406   :  { %496 = vrot.lane.b32.xlu1 %v2545_v30, %s2392_s30 }
 0x407   :  { %661 = vrot.lane.b32.xlu0 %v2545_v30, %s2393_s15 }
 0x40a   :  { %826 = vrot.lane.b32.xlu1 %v2545_v30, %s2394_s16 }
 0x40e   :  { %1007 = vrot.lane.b32.xlu1 %v2558_v33, %s2388_s28 }
 0x46a   :  { %v487_v20 = vpop.xlane.xlu0 %486 }
 0x46b   :  { %v488_v21 = vsub.f32 %v481_v61, %v487_v20 }
 0x46d   :  { %v489_v23 = vmul.f32 1.442695, %v488_v21 }
 0x46e   :  { %v652_v24 = vpop.xlane.xlu1 %651 }
 0x46f   :  { %2326 = vpow2.f32 %v489_v23  ;;  %v653_v25 = vsub.f32 %v646_v0, %v652_v24 }
 0x471   :  { %v654_v26 = vmul.f32 1.442695, %v653_v25 }
 0x472   :  { %v817_v27 = vpop.xlane.xlu0 %816 }
 0x473   :  { %2328 = vpow2.f32 %v654_v26  ;;  %v818_v28 = vsub.f32 %v811_v3, %v817_v27 }
 0x475   :  { %v819_v29 = vmul.f32 1.442695, %v818_v28 }
 0x476   :  { %v998_v31 = vpop.xlane.xlu0 %997 }
 0x477   :  { %2330 = vpow2.f32 %v819_v29  ;;  %v999_v32 = vsub.f32 %v992_v7, %v998_v31 }
 0x479   :  { %v2327_v34 = vpop.eup %2326  ;;  %v1000_v35 = vmul.f32 1.442695, %v999_v32 }
 0x47a   :  { %v491_v30 = vsel %vm243_vm3, %v2327_v34, 0.0  ;;  %v1163_v37 = vpop.xlane.xlu1 %1162 }
 0x47b   :  { %2332 = vpow2.f32 %v1000_v35  ;;  %492 = vadd.xlane.f32.xlu0 %v491_v30  ;;  %v1164_v50 = vsub.f32 %v1157_v10, %v1163_v37  ;;  %v1595_v30 = vld [vmem:[%s2794_s6 + $0x10] sm:$0xff] }
 0x47d   :  { %v2329_v36 = vpop.eup %2328  ;;  %v1165_v51 = vmul.f32 1.442695, %v1164_v50 }
 0x47e   :  { %v1328_v38 = vpop.xlane.xlu0 %1327  ;;  %v656_v39 = vsel %vm243_vm3, %v2329_v36, 0.0 }
 0x47f   :  { %v1329_v40 = vsub.f32 %v1322_v14, %v1328_v38  ;;  %657 = vadd.xlane.f32.xlu1 %v656_v39 }
 0x481   :  { %v2331_v41 = vpop.eup %2330  ;;  %v1330_v42 = vmul.f32 1.442695, %v1329_v40 }
 0x482   :  { %v1493_v43 = vpop.xlane.xlu1 %1492  ;;  %v821_v44 = vsel %vm243_vm3, %v2331_v41, 0.0  ;;  %v662_v60 = vpop.permute.xlu0 %661 }
 0x483   :  { %2334 = vpow2.f32 %v1330_v42  ;;  %822 = vadd.xlane.f32.xlu0 %v821_v44  ;;  %v1494_v52 = vsub.f32 %v1487_v17, %v1493_v43 }
 0x484   :  { %2336 = vpow2.f32 %v1165_v51 }
 0x485   :  { %v2333_v45 = vpop.eup %2332  ;;  %v1495_v53 = vmul.f32 1.442695, %v1494_v52 }
 0x486   :  { %v497_v46 = vpop.permute.xlu1 %496  ;;  %v1002_v47 = vsel %vm243_vm3, %v2333_v45, 0.0 }
 0x487   :  { %1003 = vadd.xlane.f32.xlu1 %v1002_v47  ;;  %2115 = vmatpush3.msra.mxu1 %v497_v46  ;;  %2338 = vpow2.f32 %v1495_v53 }
 0x488   :  { %2124 = vmatprep.subr.mxu1 %v2386_v22 }
 0x48a   :  { %v827_v58 = vpop.permute.xlu1 %826 }
 0x48d   :  { %v2624_v48 = vpop.eup %2334 }
 0x48e   :  { %v1332_v49 = vsel %vm243_vm3, %v2624_v48, 0.0  ;;  %v2337_v54 = vpop.eup %2336  ;;  %v1008_v61 = vpop.permute.xlu1 %1007 }
 0x48f   :  { %1333 = vadd.xlane.f32.xlu1 %v1332_v49  ;;  %v1167_v55 = vsel %vm243_vm3, %v2337_v54, 0.0 }
 0x491   :  { %v2339_v56 = vpop.eup %2338 }
 0x492   :  { %v1497_v57 = vsel %vm243_vm3, %v2339_v56, 0.0 }
 0x499   :  { %1172 = vrot.lane.b32.xlu0 %v2558_v33, %s2392_s30 }
 0x4a0   :  { %1337 = vrot.lane.b32.xlu1 %v2558_v33, %s2393_s15 }
 0x4b8   :  { %1168 = vadd.xlane.f32.xlu0 %v1167_v55 }
 0x4bc   :  { %1498 = vadd.xlane.f32.xlu0 %v1497_v57 }
 0x4d2   :  { %1502 = vrot.lane.b32.xlu0 %v2558_v33, %s2394_s16 }
 0x508   :  { %v493_v62 = vpop.xlane.xlu0 %492 }
 0x509   :  { %2340 = vrcp.f32 %v493_v62 }
 0x50c   :  { %v658_v63 = vpop.xlane.xlu1 %657 }
 0x50d   :  { %2342 = vrcp.f32 %v658_v63 }
 0x510   :  { %v823_v0 = vpop.xlane.xlu0 %822 }
 0x511   :  { %2344 = vrcp.f32 %v823_v0 }
 0x513   :  { %v2341_v1 = vpop.eup %2340 }
 0x514   :  { %v495_v2 = vmul.f32 %v2341_v1, %v2327_v34  ;;  %v1004_v3 = vpop.xlane.xlu1 %1003  ;;  %v1173_v10 = vpop.permute.xlu0 %1172  ;;  %v1594_v34 = vld [vmem:[%s2794_s6 + $0x8] sm:$0xff] }
 0x515   :  { %2346 = vrcp.f32 %v1004_v3 }
 0x516   :  { %2117 = vmatmul.mubr.msk.f32.vlgmr.msra.gmra.mrb[4].mxu1 %vm243_vm3, %v495_v2 }
 0x517   :  { %v2343_v4 = vpop.eup %2342  ;;  %2125 = vmatpush3.msra.mxu1 %v662_v60  ;;  %2126 = vmatprep.mubr.msk.f32.mxu1 %vm2387_vm2, %v2386_v22 }
 0x518   :  { %v660_v33 = vmul.f32 %v2343_v4, %v2329_v36  ;;  %2134 = vmatprep.subr.mxu1 %v2386_v22  ;;  %v1596_v36 = vld [vmem:[%s2794_s6 + $0x18] sm:$0xff] }
 0x519   :  { %v2264_v37 = vpack.c.bf16 %v1596_v36, %v1595_v30 }
 0x51a   :  { %2127 = vmatmul.mubr.msk.f32.vlgmr.msra.gmra.mrb[6].mxu1 %vm243_vm3, %v660_v33 }
 0x51b   :  { %v2345_v6 = vpop.eup %2344  ;;  %2135 = vmatpush3.msra.mxu1 %v827_v58  ;;  %2136 = vmatprep.mubr.msk.f32.mxu1 %vm2387_vm2, %v2386_v22 }
 0x51c   :  { %v825_v7 = vmul.f32 %v2345_v6, %v2331_v41  ;;  %2144 = vmatprep.subr.mxu1 %v2386_v22  ;;  %v1334_v11 = vpop.xlane.xlu1 %1333 }
 0x51e   :  { %2137 = vmatmul.mubr.msk.f32.vlgmr.msra.gmra.mrb[8].mxu1 %vm243_vm3, %v825_v7 }
 0x51f   :  { %v2347_v8 = vpop.eup %2346  ;;  %2145 = vmatpush3.msra.mxu1 %v1008_v61  ;;  %2146 = vmatprep.mubr.msk.f32.mxu1 %vm2387_vm2, %v2386_v22 }
 0x520   :  { %v1006_v9 = vmul.f32 %v2347_v8, %v2333_v45  ;;  %2154 = vmatprep.subr.mxu1 %v2386_v22  ;;  %v1338_v18 = vpop.permute.xlu1 %1337 }
 0x522   :  { %2147 = vmatmul.mubr.msk.f32.vlgmr.msra.gmra.mrb[10].mxu1 %vm243_vm3, %v1006_v9  ;;  %v1730_v9 = vld [vmem:[%s2798_s10] sm:$0xff] }
 0x523   :  { %2155 = vmatpush3.msra.mxu1 %v1173_v10  ;;  %2156 = vmatprep.mubr.msk.f32.mxu1 %vm2387_vm2, %v2386_v22  ;;  %v1731_v10 = vld [vmem:[%s2798_s10 + $0x8] sm:$0xff] }
 0x524   :  { %2164 = vmatprep.subr.mxu1 %v2386_v22 }
 0x545   :  { %v1169_v13 = vpop.xlane.xlu0 %1168 }
 0x546   :  { %2348 = vrcp.f32 %v1169_v13  ;;  %v1732_v13 = vld [vmem:[%s2798_s10 + $0x10] sm:$0xff] }
 0x547   :  { %2350 = vrcp.f32 %v1334_v11  ;;  %v2268_v11 = vpack.c.bf16 %v1731_v10, %v1730_v9  ;;  %v1990_v10 = vld [vmem:[%s2801_s13] ss:$0 sm:$0xff]  ;;  %s2362_s13 = scalar_lea.vmem %s1942_s26, 256 }
 0x548   :  { %p2363_p0 = scmp.ne.s32.totalorder %s1942_s26, %s2362_s13  ;;  %p2368_p2 = scmp.lt.s32.totalorder %s2362_s13, %s2362_s13 }
 0x549   :  { %v1499_v14 = vpop.xlane.xlu0 %1498 }
 0x54a   :  { %2352 = vrcp.f32 %v1499_v14  ;;  %v1733_v14 = vld [vmem:[%s2798_s10 + $0x18] sm:$0xff]  ;;  %p2369_p3 = por %p2368_p2, %p2367_p1 }
 0x54c   :  { %p2370_p4 = pnand %p2369_p3, %p2363_p0 }
 0x54d   :  { %v1503_v21 = vpop.permute.xlu0 %1502 }
 0x550   :  { %v2349_v15 = vpop.eup %2348 }
 0x551   :  { %v1171_v16 = vmul.f32 %v2349_v15, %v2337_v54  ;;  %v2351_v17 = vpop.eup %2350  ;;  %v2272_v15 = vpack.c.bf16 %v1733_v14, %v1732_v13 }
 0x552   :  { %v1336_v19 = vmul.f32 %v2351_v17, %v2624_v48  ;;  %v1833_v17 = vld [vmem:[%s2800_s12 + $0x8] sm:$0xff] }
 0x553   :  { %2157 = vmatmul.mubr.msk.f32.vlgmr.msra.gmra.mrb[12].mxu1 %vm243_vm3, %v1171_v16  ;;  %v1832_v16 = vld [vmem:[%s2800_s12] sm:$0xff] }
 0x554   :  { %2165 = vmatpush3.msra.mxu1 %v1338_v18  ;;  %2166 = vmatprep.mubr.msk.f32.mxu1 %vm2387_vm2, %v2386_v22  ;;  %v2353_v20 = vpop.eup %2352  ;;  %v1834_v18 = vld [vmem:[%s2800_s12 + $0x10] sm:$0xff] }
 0x555   :  { %2174 = vmatprep.subr.mxu1 %v2386_v22  ;;  %v1501_v23 = vmul.f32 %v2353_v20, %v2339_v56  ;;  %v1982_v56 = vld [vmem:[%s2795_s7] ss:$0 sm:$0xff]  ;;  %v1835_v20 = vld [vmem:[%s2800_s12 + $0x18] sm:$0xff] }
 0x557   :  { %2167 = vmatmul.mubr.msk.f32.vlgmr.msra.gmra.mrb[14].mxu1 %vm243_vm3, %v1336_v19  ;;  %v2276_v19 = vpack.c.bf16 %v1833_v17, %v1832_v16 }
 0x558   :  { %2175 = vmatpush3.msra.mxu1 %v1503_v21  ;;  %2176 = vmatprep.mubr.msk.f32.mxu1 %vm2387_vm2, %v2386_v22  ;;  %v1593_v22 = vld [vmem:[%s2794_s6] sm:$0xff]  ;;  %v2280_v21 = vpack.c.bf16 %v1835_v20, %v1834_v18 }
 0x559   :  { %v2260_v35 = vpack.c.bf16 %v1594_v34, %v1593_v22  ;;  %2277 = vmatprep.subr.bf16.mxu0 %v2276_v19  ;;  %v1985_v34 = vld [vmem:[%s2796_s8] ss:$0 sm:$0xff] }
 0x55a   :  { %2279 = vmatpush3.bf16.msra.mxu0 %v2276_v19 }
 0x55b   :  { %2177 = vmatmul.mubr.msk.f32.vlgmr.msra.gmra.mrb[16].mxu1 %vm243_vm3, %v1501_v23  ;;  %2261 = vmatprep.subr.bf16.mxu1 %v2260_v35  ;;  %v1836_v23 = vld [vmem:[%s2800_s12 + $0x20] sm:$0xff] }
 0x55c   :  { %2263 = vmatpush3.bf16.msra.mxu1 %v2260_v35  ;;  %2281 = vmatprep.subr.bf16.mxu0 %v2280_v21 }
 0x55d   :  { %2265 = vmatprep.subr.bf16.mxu1 %v2264_v37 }
 0x55e   :  { %2283 = vmatpush3.bf16.msra.mxu0 %v2280_v21 }
 0x560   :  { %2267 = vmatpush3.bf16.msra.mxu1 %v2264_v37  ;;  %v1986_v37 = vld [vmem:[%s2797_s9] ss:$0 sm:$0xff] }
 0x561   :  { %2269 = vmatprep.subr.bf16.mxu1 %v2268_v11 }
 0x5e9   :  { %v568_v24 = vpop.f32.mrb[4].mxu1 }
 0x5ea   :  { %903 = vrot.lane.b32.xlu1 %v568_v24, %s2395_s17  ;;  %v2118_v25 = vpop.f32.mrb[5].mxu1  ;;  %v1837_v24 = vld [vmem:[%s2800_s12 + $0x28] sm:$0xff] }
 0x5eb   :  { %v2284_v25 = vpack.c.bf16 %v1837_v24, %v1836_v23 }
 0x5ed   :  { %v733_v26 = vpop.f32.mrb[6].mxu1  ;;  %2285 = vmatprep.subr.bf16.mxu0 %v2284_v25 }
 0x5ee   :  { %907 = vrot.lane.b32.xlu0 %v733_v26, %s2396_s18  ;;  %v2128_v27 = vpop.f32.mrb[7].mxu1  ;;  %2287 = vmatpush3.bf16.msra.mxu0 %v2284_v25 }
 0x5f1   :  { %v898_v28 = vpop.f32.mrb[8].mxu1 }
 0x5f2   :  { %911 = vrot.lane.b32.xlu0 %v898_v28, %s2397_s19  ;;  %v2138_v29 = vpop.f32.mrb[9].mxu1 }
 0x5f5   :  { %v1079_v31 = vpop.f32.mrb[10].mxu1 }
 0x5f6   :  { %v2148_v32 = vpop.f32.mrb[11].mxu1 }
 0x626   :  { %v1244_v38 = vpop.f32.mrb[12].mxu1 }
 0x627   :  { %1579 = vrot.lane.b32.xlu1 %v1244_v38, %s2395_s17  ;;  %v2158_v39 = vpop.f32.mrb[13].mxu1 }
 0x62a   :  { %v1409_v40 = vpop.f32.mrb[14].mxu1 }
 0x62b   :  { %1583 = vrot.lane.b32.xlu1 %v1409_v40, %s2396_s18  ;;  %v2168_v41 = vpop.f32.mrb[15].mxu1 }
 0x62e   :  { %v1574_v42 = vpop.f32.mrb[16].mxu1 }
 0x62f   :  { %1587 = vrot.lane.b32.xlu0 %v1574_v42, %s2397_s19  ;;  %v2178_v43 = vpop.f32.mrb[17].mxu1  ;;  %v1838_v42 = vld [vmem:[%s2800_s12 + $0x30] sm:$0xff] }
 0x630   :  { %v1839_v43 = vld [vmem:[%s2800_s12 + $0x38] sm:$0xff] }
 0x65c   :  { %v904_v44 = vpop.permute.xlu1 %903 }
 0x65d   :  { %v914_v46 = vsel %vm243_vm3, %v2602_v59, %v904_v44  ;;  %v2288_v44 = vpack.c.bf16 %v1839_v43, %v1838_v42 }
 0x65f   :  { %2289 = vmatprep.subr.bf16.mxu0 %v2288_v44 }
 0x660   :  { %v908_v45 = vpop.permute.xlu0 %907  ;;  %2291 = vmatpush3.bf16.msra.mxu0 %v2288_v44 }
 0x661   :  { %v916_v47 = vsel %vm915_vm4, %v914_v46, %v908_v45  ;;  %v1840_v45 = vld [vmem:[%s2800_s12 + $0x40] sm:$0xff]  ;;  %v1841_v46 = vld [vmem:[%s2800_s12 + $0x48] sm:$0xff] }
 0x664   :  { %v912_v48 = vpop.permute.xlu0 %911 }
 0x665   :  { %v918_v49 = vsel %vm917_vm5, %v916_v47, %v912_v48  ;;  %v2292_v47 = vpack.c.bf16 %v1841_v46, %v1840_v45  ;;  %v1842_v48 = vld [vmem:[%s2800_s12 + $0x50] sm:$0xff] }
 0x666   :  { %2187 = vmatprep.mubr.msk.f32.mxu1 %vm63_vm0, %v918_v49  ;;  %v1843_v49 = vld [vmem:[%s2800_s12 + $0x58] sm:$0xff] }
 0x667   :  { %2293 = vmatprep.subr.bf16.mxu0 %v2292_v47 }
 0x668   :  { %2295 = vmatpush3.bf16.msra.mxu0 %v2292_v47 }
 0x699   :  { %v1580_v50 = vpop.permute.xlu1 %1579 }
 0x69a   :  { %v1590_v52 = vsel %vm243_vm3, %v1079_v31, %v1580_v50  ;;  %v2296_v50 = vpack.c.bf16 %v1843_v49, %v1842_v48 }
 0x69c   :  { %2297 = vmatprep.subr.bf16.mxu0 %v2296_v50 }
 0x69d   :  { %v1584_v51 = vpop.permute.xlu1 %1583  ;;  %2299 = vmatpush3.bf16.msra.mxu0 %v2296_v50 }
 0x69e   :  { %v1591_v53 = vsel %vm915_vm4, %v1590_v52, %v1584_v51  ;;  %v1844_v51 = vld [vmem:[%s2800_s12 + $0x60] sm:$0xff]  ;;  %v1845_v52 = vld [vmem:[%s2800_s12 + $0x68] sm:$0xff] }
 0x6a1   :  { %v1588_v54 = vpop.permute.xlu0 %1587 }
 0x6a2   :  { %v1592_v55 = vsel %vm917_vm5, %v1591_v53, %v1588_v54  ;;  %v2300_v53 = vpack.c.bf16 %v1845_v52, %v1844_v51  ;;  %v1846_v54 = vld [vmem:[%s2800_s12 + $0x70] sm:$0xff] }
 0x6a3   :  { %2188 = vmatmul.mubr.msk.f32.vlgmr.msra.gmra.mrb[18].mxu1 %vm63_vm0, %v1592_v55  ;;  %v1847_v55 = vld [vmem:[%s2800_s12 + $0x78] sm:$0xff] }
 0x6a4   :  { %2271 = vmatpush3.bf16.msra.mxu1 %v2268_v11  ;;  %2301 = vmatprep.subr.bf16.mxu0 %v2300_v53 }
 0x6a5   :  { %2273 = vmatprep.subr.bf16.mxu1 %v2272_v15  ;;  %2303 = vmatpush3.bf16.msra.mxu0 %v2300_v53 }
 0x6a8   :  { %2275 = vmatpush3.bf16.msra.mxu1 %v2272_v15 }
 0x776   :  { %v2189_v57 = vpop.f32.mrb[18].mxu1 }
 0x777   :  { %v2683_v59 = vadd.f32 %v2189_v57, %v1982_v56  ;;  %v1676_v58 = vpop.f32.mrb[19].mxu1  ;;  %v1987_v57 = vld [vmem:[%s2799_s11] ss:$0 sm:$0xff] }
 0x778   :  { %v2685_v60 = vadd.f32 %v1982_v56, %v1676_v58  ;;  %v2304_v56 = vpack.c.bf16 %v1847_v55, %v1846_v54 }
 0x779   :  { %v1690_v61 = vsel %vm63_vm0, %v2683_v59, 0.0  ;;  %v1931_v14 = vadd.f32 %v2683_v59, %v2509_v12 }
 0x77a   :  { %1691 = vadd.xlane.f32.xlu0 %v1690_v61  ;;  %v1687_v62 = vsel %vm63_vm0, %v2685_v60, 0.0  ;;  %2305 = vmatprep.subr.bf16.mxu0 %v2304_v56  ;;  %v1930_v17 = vadd.f32 %v2685_v60, %v2490_v5 }
 0x77b   :  { %1688 = vadd.xlane.f32.xlu1 %v1687_v62  ;;  %2307 = vmatpush3.bf16.msra.mxu0 %v2304_v56 }
 0x807   :  { %v1692_v63 = vpop.xlane.xlu0 %1691 }
 0x808   :  { %v1695_v0 = vmul.f32 0.03125, %v1692_v63  ;;  %v1689_v1 = vpop.xlane.xlu1 %1688 }
 0x809   :  { %v1694_v2 = vmul.f32 0.03125, %v1689_v1 }
 0x80a   :  { %v1697_v3 = vsub.f32 %v2683_v59, %v1695_v0 }
 0x80b   :  { %v1696_v4 = vsub.f32 %v2685_v60, %v1694_v2 }
 0x80c   :  { %v1699_v33 = vmul.f32 %v1697_v3, %v1697_v3 }
 0x80d   :  { %v1698_v6 = vmul.f32 %v1696_v4, %v1696_v4 }
 0x80e   :  { %v1703_v7 = vsel %vm63_vm0, %v1699_v33, 0.0 }
 0x80f   :  { %1704 = vadd.xlane.f32.xlu1 %v1703_v7  ;;  %v1700_v8 = vsel %vm63_vm0, %v1698_v6, 0.0 }
 0x810   :  { %1701 = vadd.xlane.f32.xlu0 %v1700_v8 }
 0x89c   :  { %v1705_v26 = vpop.xlane.xlu1 %1704 }
 0x89d   :  { %v1707_v27 = vmul.f32 0.03125, %v1705_v26  ;;  %v1702_v28 = vpop.xlane.xlu0 %1701 }
 0x89e   :  { %v1706_v29 = vmul.f32 0.03125, %v1702_v28 }
 0x89f   :  { %v1709_v31 = vadd.f32 1e-05, %v1707_v27 }
 0x8a0   :  { %v1708_v32 = vadd.f32 1e-05, %v1706_v29 }
 0x8a1   :  { %2354 = vrsqrt.f32 %v1709_v31 }
 0x8a2   :  { %2356 = vrsqrt.f32 %v1708_v32 }
 0x8ab   :  { %v2355_v22 = vpop.eup %2354 }
 0x8ac   :  { %v2357_v35 = vpop.eup %2356  ;;  %v1713_v30 = vmul.f32 %v2355_v22, %v1697_v3 }
 0x8ad   :  { %v1712_v36 = vmul.f32 %v2357_v35, %v1696_v4 }
 0x8ae   :  { %v1721_v38 = vmul.f32 %v1985_v34, %v1713_v30 }
 0x8af   :  { %v1720_v39 = vmul.f32 %v1985_v34, %v1712_v36 }
 0x8b0   :  { %v1729_v41 = vadd.f32 %v1986_v37, %v1721_v38 }
 0x8b1   :  { %v1728_v40 = vadd.f32 %v1986_v37, %v1720_v39 }
 0x8b3   :  { %2198 = vmatprep.mubr.msk.f32.mxu1 %vm63_vm0, %v1728_v40 }
 0x8b4   :  { %2199 = vmatmul.mubr.msk.f32.vlgmr.msra.gmra.mrb[20].mxu1 %vm63_vm0, %v1729_v41 }
 0x987   :  { %v2200_v58 = vpop.f32.mrb[20].mxu1 }
 0x988   :  { %v1819_v61 = vadd.f32 %v2200_v58, %v1987_v57  ;;  %v1813_v62 = vpop.f32.mrb[21].mxu1 }
 0x989   :  { %v1814_v63 = vadd.f32 %v1987_v57, %v1813_v62 }
 0x98a   :  { %v1825_v0 = vmul.f32 0.70710677, %v1819_v61  ;;  %v1823_v7 = vmul.f32 0.5, %v1819_v61 }
 0x98b   :  { %v1824_v1 = vmul.f32 0.70710677, %v1814_v63  ;;  %v1822_v33 = vmul.f32 0.5, %v1814_v63 }
 0x98c   :  { %2358 = verf.f32 %v1825_v0 }
 0x98d   :  { %2360 = verf.f32 %v1824_v1 }
 0x996   :  { %v2359_v2 = vpop.eup %2358 }
 0x997   :  { %v2361_v3 = vpop.eup %2360  ;;  %v1829_v4 = vadd.f32 1.0, %v2359_v2 }
 0x998   :  { %v1828_v6 = vadd.f32 1.0, %v2361_v3 }
 0x999   :  { %v1831_v9 = vmul.f32 %v1829_v4, %v1823_v7 }
 0x99a   :  { %v1830_v8 = vmul.f32 %v1828_v6, %v1822_v33 }
 0x99c   :  { %2233 = vmatprep.mubr.f32.mxu0 %v1830_v8 }
 0x99d   :  { %2234 = vmatmul.mubr.f32.vlgmr.msra.gmra.mrb[18].mxu0 %v1831_v9 }
 0xa70   :  { %v2235_v11 = vpop.f32.mrb[18].mxu0 }
 0xa71   :  { %v1927_v13 = vadd.f32 %v2235_v11, %v1990_v10  ;;  %v1921_v15 = vpop.f32.mrb[19].mxu0 }
 0xa72   :  { %v1922_v16 = vadd.f32 %v1990_v10, %v1921_v15 }
 0xa73   :  { %v1933_v18 = vadd.f32 %v1931_v14, %v1927_v13 }
 0xa74   :  { %v1932_v19 = vadd.f32 %v1930_v17, %v1922_v16 }
 0xa75   :  { %1935 = vst.msk [vmem:[#allocation2 + $0x8] sm:$0xff] %vm63_vm0, %v1933_v18 }
 0xa76   :  { %1934 = vst.msk [vmem:[#allocation2] sm:$0xff] %vm63_vm0, %v1932_v19 }
 0xa77   :  { %2373 = shalt.err (!%p2370_p4)
}
 0xa78   :  { %s2374_s7 = scalar_lea.hbm %s2802_s14, 256 }
 0xa79   :  { %p2375_p5 = scmp.ne.s32.totalorder %s2802_s14, %s2374_s7  ;;  %p2378_p6 = scmp.lt.u32.totalorder %s2374_s7, %s2802_s14 }
 0xa7b   :  { %p2380_p7 = pnand %p2378_p6, %p2375_p5 }
 0xa7d   :  { %2383 = shalt.err (!%p2380_p7)
}
 0xa7e   :  { %s2399_s27 = smov 128  }
 0xa7f   :  { %1947 = dma.vmem_to_hbm [thread:$0]  %s1942_s26, 256, %s2802_s14, [#allocation3], %s2399_s27, %s2399_s27, %s2395_s17  }
 0xa80   :  { %2384 = dma.done.wait [#allocation3], 256  }
 0xa81   :  { %2385 = vsyncadd [#allocation3], 4294967040 }
 0xa82   :  { %1951 = vsyncpa [#allocation3], 1 }

</bundles_post_ra>
